<compile_context>
chip_gen: v6e
topology: v6e:2x2x1
jax: 0.10.0
libtpu: 0.0.40
codegen_flags: <defaults>
</compile_context>

<pallas_src>
import jax
import jax.numpy as jnp
from jax.experimental import pallas as pl
from jax.experimental.pallas import tpu as pltpu


# ---------------------------------------------------------------------------
# Fused kernel: MLP (tanh chain, last layer applied twice) + 1x1 conv epilogue
# ---------------------------------------------------------------------------
def fused_mlp_conv_kernel(x_ref, w0_ref, b0_ref, wh_ref, bh_ref,
                          wl_ref, bl_ref, cw_ref, cb_ref, o_ref):
    # ----- MLP over rows (PyTorch Linear acts on the last dim) -----
    # bf16 MXU operands, f32 accumulation; bias + tanh in f32.
    h = jnp.tanh(
        jnp.dot(x_ref[...].astype(jnp.bfloat16), w0_ref[...],
                preferred_element_type=jnp.float32) + b0_ref[...])
    n_layers = wh_ref.shape[0]
    for i in range(n_layers):
        h = jnp.tanh(
            jnp.dot(h.astype(jnp.bfloat16), wh_ref[i],
                    preferred_element_type=jnp.float32) + bh_ref[i])
    # torch forward applies all_layers[-1] one extra time; this copy of the last
    # weight is zero-padded to 128 output lanes, so everything downstream (and
    # the output store) is lane-dense.  Pad columns hold tanh(0) = 0.
    h = jnp.tanh(
        jnp.dot(h.astype(jnp.bfloat16), wl_ref[...],
                preferred_element_type=jnp.float32) + bl_ref[...])

    # ----- fused 1x1 conv: VPU multiply + sublane (XLU) reduce over channels --
    tm, k_pad = h.shape
    c = cw_ref.shape[0]
    g = tm // c                      # whole channel groups per tile (guaranteed)
    h3 = h.reshape(g, c, k_pad)      # major-dim split only (c % 8 == 0)
    out = jnp.sum(h3 * cw_ref[...], axis=1) + cb_ref[...]
    o_ref[...] = out.astype(o_ref.dtype)


# ---------------------------------------------------------------------------
# Tiling / VMEM sizing helpers
# ---------------------------------------------------------------------------
def _rup(x, m):
    return (x + m - 1) // m * m


def _pad2(rows, cols, itemsize, sublane):
    """VMEM bytes of a 2-D tile after (sublane, 128)-lane padding."""
    return _rup(max(rows, 1), sublane) * _rup(max(cols, 1), 128) * itemsize


def _vmem_bytes_per_step(tg, c, s, k, k_pad, n_layers):
    tm = tg * c
    x_tile = 2 * _pad2(tm, s, 4, 8)                  # f32 input tile, double-buffered
    out_tile = 2 * _pad2(tg, k_pad, 4, 8)            # f32 output tile, double-buffered
    # NOTE: weight BlockSpecs use the default (double) buffering even though
    # their index_map is constant; the x2 below accounts for it.
    weights = 2 * (_pad2(s, k, 2, 16)                # w0 (bf16)
                   + n_layers * _pad2(k, k, 2, 16)   # hidden layers (bf16)
                   + _pad2(k, k_pad, 2, 16)          # padded last layer (bf16)
                   + (2 + n_layers) * _pad2(1, k_pad, 4, 8)   # biases (f32)
                   + _pad2(c, 1, 4, 8) + _pad2(1, 1, 4, 8))   # conv w / b (f32)
    acts = 2 * _pad2(tm, k_pad, 4, 8)                # live h + (g, c, k_pad) temp
    return x_tile + out_tile + weights + acts


def _tpu_core_info():
    """(TensorCores a 'parallel' grid axis can use, physical VMEM per core)."""
    try:
        kind = jax.devices()[0].device_kind.lower()
    except Exception:
        kind = ""
    if "v7" in kind:
        return 2, 64 << 20           # v7x: 2 TCs / chip, 64 MiB VMEM per TC
    return 1, 128 << 20              # v5e / v6e: 1 TC, 128 MiB VMEM


def _pick_tiling(groups, c, s, k, k_pad, n_layers):
    num_cores, vmem_phys = _tpu_core_info()
    # Streamed-tile budget with double-buffering headroom; v7x has only 64 MiB.
    budget = (24 << 20) if vmem_phys <= (64 << 20) else (64 << 20)

    def fits(d):
        return _vmem_bytes_per_step(d, c, s, k, k_pad, n_layers) <= budget

    tg = groups                      # preferred: everything in one grid step
    if not fits(tg):
        for d in sorted((d for d in range(8, groups, 8) if groups % d == 0),
                        reverse=True):
            if fits(d):
                tg = d
                break
        # If no 8-aligned divisor fits, keep tg = groups and raise the limit.

    # v7x: use both TensorCores when the split stays group- and 8-aligned.
    if num_cores >= 2 and tg == groups and groups % num_cores == 0:
        half = groups // num_cores
        if half % 8 == 0 and fits(half):
            tg = half

    need = _vmem_bytes_per_step(tg, c, s, k, k_pad, n_layers)
    cap = (48 << 20) if vmem_phys <= (64 << 20) else (100 << 20)
    vmem_limit = int(min(max(2 * need, 32 << 20), cap))
    return tg, vmem_limit


# ---------------------------------------------------------------------------
# pallas_call wrapper
# ---------------------------------------------------------------------------
def fused_forward_pallas(x_flat, w0, b0, wh, bh, conv_w, conv_b):
    m, s = x_flat.shape
    k = w0.shape[1]
    c = conv_w.shape[0]
    n_layers = wh.shape[0]
    assert m % c == 0, "rows must pack whole channel groups"
    groups = m // c
    k_pad = _rup(max(k, 128), 128)                   # lane-dense output width
    tg, vmem_limit = _pick_tiling(groups, c, s, k, k_pad, n_layers)
    grid = (groups // tg,)
    tm = tg * c

    # Weights cast to bf16 for the MXU; biases / conv params stay f32.
    w0b = w0.astype(jnp.bfloat16)
    whb = wh.astype(jnp.bfloat16)
    b0f = b0.astype(jnp.float32)
    bhf = bh.astype(jnp.float32)
    # Lane-padded copy of the last layer (applied a second time by the torch
    # forward); zero padding keeps the pad lanes at tanh(0) = 0.
    wl = jnp.pad(wh[-1], ((0, 0), (0, k_pad - k))).astype(jnp.bfloat16)
    bl = jnp.pad(bh[-1], ((0, 0), (0, k_pad - k))).astype(jnp.float32)
    cw = conv_w.reshape(c, 1).astype(jnp.float32)    # sublane-oriented weights
    cb = conv_b.reshape(1, 1).astype(jnp.float32)

    padded = pl.pallas_call(
        fused_mlp_conv_kernel,
        out_shape=jax.ShapeDtypeStruct((groups, k_pad), jnp.float32),
        grid=grid,
        in_specs=[
            pl.BlockSpec((tm, s), lambda i: (i, 0)),               # x (streamed)
            pl.BlockSpec((s, k), lambda i: (0, 0)),                # w0
            pl.BlockSpec((1, k), lambda i: (0, 0)),                # b0
            pl.BlockSpec((n_layers, k, k), lambda i: (0, 0, 0)),   # wh
            pl.BlockSpec((n_layers, 1, k), lambda i: (0, 0, 0)),   # bh
            pl.BlockSpec((k, k_pad), lambda i: (0, 0)),            # wh[-1] padded
            pl.BlockSpec((1, k_pad), lambda i: (0, 0)),            # bh[-1] padded
            pl.BlockSpec((c, 1), lambda i: (0, 0)),                # conv weight
            pl.BlockSpec((1, 1), lambda i: (0, 0)),                # conv bias
        ],
        out_specs=pl.BlockSpec((tg, k_pad), lambda i: (i, 0)),
        compiler_params=pltpu.CompilerParams(
            dimension_semantics=("parallel",),
            vmem_limit_bytes=vmem_limit),
    )(x_flat, w0b, b0f, whb, bhf, wl, bl, cw, cb)
    return padded[:, :k]                             # drop lane padding


# ---------------------------------------------------------------------------
# Full module forward (layout plumbing only; all compute lives in the kernel)
# ---------------------------------------------------------------------------
@jax.jit
def my_module_forward(x, w0, b0, wh, bh, conv_w, conv_b):
    n, c, hh, s = x.shape
    k = w0.shape[1]
    assert c == conv_w.shape[0], "conv input channels must match x channel dim"
    # (N, C, H, S) -> (N, H, C, S) so each (n, h) channel group is contiguous,
    # letting the fused conv reduce over C without straddling tile boundaries.
    x_flat = jnp.transpose(x, (0, 2, 1, 3)).reshape(n * hh * c, s)
    out2d = fused_forward_pallas(x_flat, w0, b0, wh, bh, conv_w, conv_b)  # (N*H, K)
    return out2d.reshape(n, hh, k)[:, None, :, :]                        # (N,1,H,K)


def reference_forward(x, w0, b0, wh, bh, conv_w, conv_b):
    n, c, hh, s = x.shape
    k = w0.shape[1]
    h = jnp.tanh(x.reshape(n * c * hh, s) @ w0 + b0)
    for i in range(wh.shape[0]):
        h = jnp.tanh(h @ wh[i] + bh[i])
    h = jnp.tanh(h @ wh[-1] + bh[-1])
    v1 = h.reshape(n, c, hh, k)
    out = jnp.einsum("nchw,c->nhw", v1, conv_w) + conv_b[0]
    return out[:, None, :, :]


if __name__ == "__main__":
    n_states, n_hidden, n_layers = 16, 32, 2
    N, H = 2, 4  # batch, height; width == n_states; channels == n_hidden

    key = jax.random.PRNGKey(0)
    ks = jax.random.split(key, 7)
    x = jax.random.normal(ks[0], (N, n_hidden, H, n_states), jnp.float32)

    # Parameters stored as (in, out), i.e. W^T of torch's Linear weights.
    w0 = jax.random.normal(ks[1], (n_states, n_hidden), jnp.float32) * 0.1
    b0 = jax.random.normal(ks[2], (1, n_hidden), jnp.float32) * 0.1
    wh = jax.random.normal(ks[3], (n_layers, n_hidden, n_hidden), jnp.float32) * 0.1
    bh = jax.random.normal(ks[4], (n_layers, 1, n_hidden), jnp.float32) * 0.1
    conv_w = jax.random.normal(ks[5], (n_hidden,), jnp.float32) * 0.1  # Conv2d(n_hidden,1,1)
    conv_b = jax.random.normal(ks[6], (1,), jnp.float32) * 0.1

    out = my_module_forward(x, w0, b0, wh, bh, conv_w, conv_b)
    out = jax.block_until_ready(out)

    ref = reference_forward(x, w0, b0, wh, bh, conv_w, conv_b)
    assert out.shape == (N, 1, H, n_hidden), out.shape
    # bf16 MXU operands vs f32 reference -> loosened tolerance per perf review.
    assert jnp.allclose(out, ref, atol=3e-2, rtol=3e-2), "mismatch vs reference"

    print("KERNEL_OK")
</pallas_src>

<mosaic_0001>
module attributes {stable_mosaic.version = 11 : i64} {
  func.func @fused_mlp_conv_kernel(%arg0: i32, %arg1: memref<256x16xf32, #tpu.memory_space<vmem>>, %arg2: memref<16x32xbf16, #tpu.memory_space<vmem>>, %arg3: memref<1x32xf32, #tpu.memory_space<vmem>>, %arg4: memref<2x32x32xbf16, #tpu.memory_space<vmem>>, %arg5: memref<2x1x32xf32, #tpu.memory_space<vmem>>, %arg6: memref<32x128xbf16, #tpu.memory_space<vmem>>, %arg7: memref<1x128xf32, #tpu.memory_space<vmem>>, %arg8: memref<32x1xf32, #tpu.memory_space<vmem>>, %arg9: memref<1x1xf32, #tpu.memory_space<vmem>>, %arg10: memref<8x128xf32, #tpu.memory_space<vmem>>) attributes {dimension_semantics = [#tpu.dimension_semantics<parallel>], iteration_bounds = array<i64: 1>, scalar_prefetch = 0 : i64, scratch_operands = 0 : i64, tpu.core_type = #tpu.core_type<tc>, window_params = [{transform_indices = @transform_0, window_bounds = array<i64: 256, 16>}, {pipeline_mode = #tpu.pipeline_mode<synchronous>, transform_indices = @transform_1, window_bounds = array<i64: 16, 32>}, {pipeline_mode = #tpu.pipeline_mode<synchronous>, transform_indices = @transform_2, window_bounds = array<i64: 1, 32>}, {pipeline_mode = #tpu.pipeline_mode<synchronous>, transform_indices = @transform_3, window_bounds = array<i64: 2, 32, 32>}, {pipeline_mode = #tpu.pipeline_mode<synchronous>, transform_indices = @transform_4, window_bounds = array<i64: 2, 1, 32>}, {pipeline_mode = #tpu.pipeline_mode<synchronous>, transform_indices = @transform_5, window_bounds = array<i64: 32, 128>}, {pipeline_mode = #tpu.pipeline_mode<synchronous>, transform_indices = @transform_6, window_bounds = array<i64: 1, 128>}, {pipeline_mode = #tpu.pipeline_mode<synchronous>, transform_indices = @transform_7, window_bounds = array<i64: 32, 1>}, {pipeline_mode = #tpu.pipeline_mode<synchronous>, transform_indices = @transform_8, window_bounds = array<i64: 1, 1>}, {transform_indices = @transform_9, window_bounds = array<i64: 8, 128>}]} {
    %c0 = arith.constant 0 : index
    %c0_0 = arith.constant 0 : index
    %0 = vector.load %arg1[%c0, %c0_0] : memref<256x16xf32, #tpu.memory_space<vmem>>, vector<256x16xf32>
    %1 = arith.truncf %0 : vector<256x16xf32> to vector<256x16xbf16>
    %c0_1 = arith.constant 0 : index
    %c0_2 = arith.constant 0 : index
    %2 = vector.load %arg2[%c0_1, %c0_2] : memref<16x32xbf16, #tpu.memory_space<vmem>>, vector<16x32xbf16>
    %cst = arith.constant dense<0.000000e+00> : vector<256x32xf32>
    %3 = tpu.matmul %1, %2, %cst {dimension_numbers = #tpu.dot_dimension_numbers<[1], [0], [0], [1], [0, 0, 1, 1], [], []>} : vector<256x16xbf16>, vector<16x32xbf16>, vector<256x32xf32> -> vector<256x32xf32>
    %c0_3 = arith.constant 0 : index
    %c0_4 = arith.constant 0 : index
    %4 = vector.load %arg3[%c0_3, %c0_4] : memref<1x32xf32, #tpu.memory_space<vmem>>, vector<1x32xf32>
    %5 = vector.broadcast %4 : vector<1x32xf32> to vector<256x32xf32>
    %6 = arith.addf %3, %5 : vector<256x32xf32>
    %7 = math.tanh %6 : vector<256x32xf32>
    %8 = arith.truncf %7 : vector<256x32xf32> to vector<256x32xbf16>
    %c0_5 = arith.constant 0 : index
    %c0_6 = arith.constant 0 : index
    %c0_7 = arith.constant 0 : index
    %9 = vector.load %arg4[%c0_5, %c0_6, %c0_7] : memref<2x32x32xbf16, #tpu.memory_space<vmem>>, vector<1x32x32xbf16>
    %10 = vector.shape_cast %9 : vector<1x32x32xbf16> to vector<32x32xbf16>
    %cst_8 = arith.constant dense<0.000000e+00> : vector<256x32xf32>
    %11 = tpu.matmul %8, %10, %cst_8 {dimension_numbers = #tpu.dot_dimension_numbers<[1], [0], [0], [1], [0, 0, 1, 1], [], []>} : vector<256x32xbf16>, vector<32x32xbf16>, vector<256x32xf32> -> vector<256x32xf32>
    %c0_9 = arith.constant 0 : index
    %c0_10 = arith.constant 0 : index
    %c0_11 = arith.constant 0 : index
    %12 = vector.load %arg5[%c0_9, %c0_10, %c0_11] : memref<2x1x32xf32, #tpu.memory_space<vmem>>, vector<1x1x32xf32>
    %13 = vector.shape_cast %12 : vector<1x1x32xf32> to vector<1x32xf32>
    %14 = vector.broadcast %13 : vector<1x32xf32> to vector<256x32xf32>
    %15 = arith.addf %11, %14 : vector<256x32xf32>
    %16 = math.tanh %15 : vector<256x32xf32>
    %17 = arith.truncf %16 : vector<256x32xf32> to vector<256x32xbf16>
    %c1 = arith.constant 1 : index
    %c0_12 = arith.constant 0 : index
    %c0_13 = arith.constant 0 : index
    %18 = vector.load %arg4[%c1, %c0_12, %c0_13] : memref<2x32x32xbf16, #tpu.memory_space<vmem>>, vector<1x32x32xbf16>
    %19 = vector.shape_cast %18 : vector<1x32x32xbf16> to vector<32x32xbf16>
    %cst_14 = arith.constant dense<0.000000e+00> : vector<256x32xf32>
    %20 = tpu.matmul %17, %19, %cst_14 {dimension_numbers = #tpu.dot_dimension_numbers<[1], [0], [0], [1], [0, 0, 1, 1], [], []>} : vector<256x32xbf16>, vector<32x32xbf16>, vector<256x32xf32> -> vector<256x32xf32>
    %c1_15 = arith.constant 1 : index
    %c0_16 = arith.constant 0 : index
    %c0_17 = arith.constant 0 : index
    %21 = vector.load %arg5[%c1_15, %c0_16, %c0_17] : memref<2x1x32xf32, #tpu.memory_space<vmem>>, vector<1x1x32xf32>
    %22 = vector.shape_cast %21 : vector<1x1x32xf32> to vector<1x32xf32>
    %23 = vector.broadcast %22 : vector<1x32xf32> to vector<256x32xf32>
    %24 = arith.addf %20, %23 : vector<256x32xf32>
    %25 = math.tanh %24 : vector<256x32xf32>
    %26 = arith.truncf %25 : vector<256x32xf32> to vector<256x32xbf16>
    %c0_18 = arith.constant 0 : index
    %c0_19 = arith.constant 0 : index
    %27 = vector.load %arg6[%c0_18, %c0_19] : memref<32x128xbf16, #tpu.memory_space<vmem>>, vector<32x128xbf16>
    %cst_20 = arith.constant dense<0.000000e+00> : vector<256x128xf32>
    %28 = tpu.matmul %26, %27, %cst_20 {dimension_numbers = #tpu.dot_dimension_numbers<[1], [0], [0], [1], [0, 0, 1, 1], [], []>} : vector<256x32xbf16>, vector<32x128xbf16>, vector<256x128xf32> -> vector<256x128xf32>
    %c0_21 = arith.constant 0 : index
    %c0_22 = arith.constant 0 : index
    %29 = vector.load %arg7[%c0_21, %c0_22] : memref<1x128xf32, #tpu.memory_space<vmem>>, vector<1x128xf32>
    %30 = vector.broadcast %29 : vector<1x128xf32> to vector<256x128xf32>
    %31 = arith.addf %28, %30 : vector<256x128xf32>
    %32 = math.tanh %31 : vector<256x128xf32>
    %33 = vector.shape_cast %32 : vector<256x128xf32> to vector<8x32x128xf32>
    %c0_23 = arith.constant 0 : index
    %c0_24 = arith.constant 0 : index
    %34 = vector.load %arg8[%c0_23, %c0_24] : memref<32x1xf32, #tpu.memory_space<vmem>>, vector<32x1xf32>
    %35 = vector.shape_cast %34 : vector<32x1xf32> to vector<1x32x1xf32>
    %36 = vector.broadcast %35 : vector<1x32x1xf32> to vector<8x32x128xf32>
    %37 = arith.mulf %33, %36 : vector<8x32x128xf32>
    %cst_25 = arith.constant dense<0.000000e+00> : vector<8x128xf32>
    %38 = vector.multi_reduction <add>, %37, %cst_25 [1] : vector<8x32x128xf32> to vector<8x128xf32>
    %c0_26 = arith.constant 0 : index
    %c0_27 = arith.constant 0 : index
    %39 = vector.load %arg9[%c0_26, %c0_27] : memref<1x1xf32, #tpu.memory_space<vmem>>, vector<1x1xf32>
    %40 = vector.broadcast %39 : vector<1x1xf32> to vector<8x128xf32>
    %41 = arith.addf %38, %40 : vector<8x128xf32>
    %c0_28 = arith.constant 0 : index
    %c0_29 = arith.constant 0 : index
    %42 = vector.load %arg10[%c0_28, %c0_29] : memref<8x128xf32, #tpu.memory_space<vmem>>, vector<8x128xf32>
    tpu.vector_store %arg10[%c0_28, %c0_29], %41 {strides = array<i32>} : memref<8x128xf32, #tpu.memory_space<vmem>>, vector<8x128xf32>,
    return
  }
  func.func @transform_0(%arg0: i32) -> (i32, i32) {
    %c0_i32 = arith.constant 0 : i32
    %c0_i32_0 = arith.constant 0 : i32
    return %arg0, %c0_i32 : i32, i32
  }
  func.func @transform_1(%arg0: i32) -> (i32, i32) {
    %c0_i32 = arith.constant 0 : i32
    %c0_i32_0 = arith.constant 0 : i32
    %c0_i32_1 = arith.constant 0 : i32
    return %c0_i32, %c0_i32_0 : i32, i32
  }
  func.func @transform_2(%arg0: i32) -> (i32, i32) {
    %c0_i32 = arith.constant 0 : i32
    %c0_i32_0 = arith.constant 0 : i32
    %c0_i32_1 = arith.constant 0 : i32
    return %c0_i32, %c0_i32_0 : i32, i32
  }
  func.func @transform_3(%arg0: i32) -> (i32, i32, i32) {
    %c0_i32 = arith.constant 0 : i32
    %c0_i32_0 = arith.constant 0 : i32
    %c0_i32_1 = arith.constant 0 : i32
    %c0_i32_2 = arith.constant 0 : i32
    return %c0_i32, %c0_i32_0, %c0_i32_1 : i32, i32, i32
  }
  func.func @transform_4(%arg0: i32) -> (i32, i32, i32) {
    %c0_i32 = arith.constant 0 : i32
    %c0_i32_0 = arith.constant 0 : i32
    %c0_i32_1 = arith.constant 0 : i32
    %c0_i32_2 = arith.constant 0 : i32
    return %c0_i32, %c0_i32_0, %c0_i32_1 : i32, i32, i32
  }
  func.func @transform_5(%arg0: i32) -> (i32, i32) {
    %c0_i32 = arith.constant 0 : i32
    %c0_i32_0 = arith.constant 0 : i32
    %c0_i32_1 = arith.constant 0 : i32
    return %c0_i32, %c0_i32_0 : i32, i32
  }
  func.func @transform_6(%arg0: i32) -> (i32, i32) {
    %c0_i32 = arith.constant 0 : i32
    %c0_i32_0 = arith.constant 0 : i32
    %c0_i32_1 = arith.constant 0 : i32
    return %c0_i32, %c0_i32_0 : i32, i32
  }
  func.func @transform_7(%arg0: i32) -> (i32, i32) {
    %c0_i32 = arith.constant 0 : i32
    %c0_i32_0 = arith.constant 0 : i32
    %c0_i32_1 = arith.constant 0 : i32
    return %c0_i32, %c0_i32_0 : i32, i32
  }
  func.func @transform_8(%arg0: i32) -> (i32, i32) {
    %c0_i32 = arith.constant 0 : i32
    %c0_i32_0 = arith.constant 0 : i32
    %c0_i32_1 = arith.constant 0 : i32
    return %c0_i32, %c0_i32_0 : i32, i32
  }
  func.func @transform_9(%arg0: i32) -> (i32, i32) {
    %c0_i32 = arith.constant 0 : i32
    %c0_i32_0 = arith.constant 0 : i32
    return %arg0, %c0_i32 : i32, i32
  }
}

</mosaic_0001>

<bundles_post_ra>
// kernel: my_module_forward.1
= control target key start
LH: loop header
LB: loop body
LE: loop exit
PB: predicated region body
PF: predicated region fallthrough
CT: control target
= control target key end

     0   :  { %s2396_s0 = inlined_call_operand.vmem [shape: f32[256,16], index: 0, kind: input, shape index: {}]   ;;  %s2397_s1 = inlined_call_operand.vmem [shape: bf16[16,32], index: 1, kind: input, shape index: {}]   ;;  %s2398_s2 = inlined_call_operand.vmem [shape: f32[1,32], index: 2, kind: input, shape index: {}]   ;;  %s2399_s3 = inlined_call_operand.vmem [shape: bf16[2,32,32], index: 3, kind: input, shape index: {}]   ;;  %s2400_s4 = inlined_call_operand.vmem [shape: f32[2,1,32], index: 4, kind: input, shape index: {}]   ;;  %s2401_s5 = inlined_call_operand.vmem [shape: bf16[32,128], index: 5, kind: input, shape index: {}]   ;;  %s2402_s6 = inlined_call_operand.vmem [shape: f32[1,128], index: 6, kind: input, shape index: {}]   ;;  %s2403_s7 = inlined_call_operand.vmem [shape: f32[32,1], index: 7, kind: input, shape index: {}]   ;;  %s2404_s8 = inlined_call_operand.<no memory space> [shape: f32[1,1], index: 8, kind: input, shape index: {}]   ;;  %s2405_s9 = inlined_call_operand.hbm [shape: f32[8,128], index: 9, kind: output, shape index: {}]  }
   0x1   :  { %v14_v0 = vstv %s2404_s8 }
   0x2   :  { %15 = vst [vmem:[#allocation2] sm:$0x1] %v14_v0 }
   0x3   :  { %v1666_v1 = vld [vmem:[%s2397_s1] sm:$0xff]   ;;  %v37_v3 = vld [vmem:[%s2396_s0 + $0x8] sm:$0xff]  ;;  %vm99_vm0 = vcmask 130048   ;;  %v38_v4 = vld [vmem:[%s2396_s0 + $0x10] sm:$0xff] }
   0x4   :  { %v36_v2 = vld [vmem:[%s2396_s0] sm:$0xff]  ;;  %1520 = vmatprep.subr.bf16.mxu0 %v1666_v1  ;;  %v39_v6 = vld [vmem:[%s2396_s0 + $0x18] sm:$0xff]  ;;  %v41_v8 = vld [vmem:[%s2396_s0 + $0x28] sm:$0xff] }
   0x5   :  { %v68_v5 = vpack.c.bf16 %v37_v3, %v36_v2  ;;  %v40_v7 = vld [vmem:[%s2396_s0 + $0x20] sm:$0xff]  ;;  %1521 = vmatpush3.bf16.msra.mxu0 %v1666_v1  ;;  %v69_v9 = vpack.c.bf16 %v39_v6, %v38_v4  ;;  %v42_v11 = vld [vmem:[%s2396_s0 + $0x30] sm:$0xff]  ;;  %v43_v12 = vld [vmem:[%s2396_s0 + $0x38] sm:$0xff] }
   0x6   :  { %v70_v10 = vpack.c.bf16 %v41_v8, %v40_v7  ;;  %v44_v13 = vld [vmem:[%s2396_s0 + $0x40] sm:$0xff]  ;;  %v45_v14 = vld [vmem:[%s2396_s0 + $0x48] sm:$0xff]  ;;  %v71_v15 = vpack.c.bf16 %v43_v12, %v42_v11  ;;  %v46_v17 = vld [vmem:[%s2396_s0 + $0x50] sm:$0xff] }
   0x7   :  { %1522 = vmatprep.mubr.msk.bf16.mxu0 %vm99_vm0, %v68_v5  ;;  %v72_v16 = vpack.c.bf16 %v45_v14, %v44_v13  ;;  %v47_v18 = vld [vmem:[%s2396_s0 + $0x58] sm:$0xff] }
   0x8   :  { %1523 = vmatmul.mubr.msk.bf16.vlgmr.msra.gmra.mxu0 %vm99_vm0, %v69_v9 }
   0x9   :  { %1526 = vmatprep.mubr.msk.bf16.mxu0 %vm99_vm0, %v70_v10 }
  0x10   :  { %1527 = vmatmul.mubr.msk.bf16.gmra.mxu0 %vm99_vm0, %v71_v15 }
  0x11   :  { %1530 = vmatprep.mubr.msk.bf16.mxu0 %vm99_vm0, %v72_v16 }
  0x12   :  { %16 = vsyncpa [#allocation4], 0  ;;  %v48_v19 = vld [vmem:[%s2396_s0 + $0x60] sm:$0xff]  ;;  %v49_v20 = vld [vmem:[%s2396_s0 + $0x68] sm:$0xff]  ;;  %v73_v21 = vpack.c.bf16 %v47_v18, %v46_v17  ;;  %vm380_vm1 = vcmask 261120   ;;  %vm1338_vm2 = vcmask 1041409  }
  0x13   :  { %v74_v22 = vpack.c.bf16 %v49_v20, %v48_v19  ;;  %v50_v23 = vld [vmem:[%s2396_s0 + $0x70] sm:$0xff]  ;;  %v51_v24 = vld [vmem:[%s2396_s0 + $0x78] sm:$0xff]  ;;  %v52_v25 = vld [vmem:[%s2396_s0 + $0x80] sm:$0xff]  ;;  %vm1340_vm3 = vcmask 1042434   ;;  %vm1342_vm4 = vcmask 1043459   ;;  %vm1344_vm5 = vcmask 1044484  }
  0x14   :  { %v53_v26 = vld [vmem:[%s2396_s0 + $0x88] sm:$0xff]  ;;  %v75_v27 = vpack.c.bf16 %v51_v24, %v50_v23  ;;  %v54_v29 = vld [vmem:[%s2396_s0 + $0x90] sm:$0xff]  ;;  %v55_v30 = vld [vmem:[%s2396_s0 + $0x98] sm:$0xff]  ;;  %vm1346_vm6 = vcmask 1045509   ;;  %vm1348_vm7 = vcmask 1046534   ;;  %vm1350_vm8 = vcmask 1047559  }
  0x15   :  { %v76_v28 = vpack.c.bf16 %v53_v26, %v52_v25  ;;  %v56_v31 = vld [vmem:[%s2396_s0 + $0xa0] sm:$0xff]  ;;  %v57_v32 = vld [vmem:[%s2396_s0 + $0xa8] sm:$0xff]  ;;  %v77_v33 = vpack.c.bf16 %v55_v30, %v54_v29  ;;  %v58_v35 = vld [vmem:[%s2396_s0 + $0xb0] sm:$0xff] }
  0x16   :  { %v78_v34 = vpack.c.bf16 %v57_v32, %v56_v31  ;;  %v59_v36 = vld [vmem:[%s2396_s0 + $0xb8] sm:$0xff]  ;;  %v60_v37 = vld [vmem:[%s2396_s0 + $0xc0] sm:$0xff]  ;;  %v61_v38 = vld [vmem:[%s2396_s0 + $0xc8] sm:$0xff] }
  0x17   :  { %v79_v39 = vpack.c.bf16 %v59_v36, %v58_v35  ;;  %v80_v40 = vpack.c.bf16 %v61_v38, %v60_v37  ;;  %v62_v41 = vld [vmem:[%s2396_s0 + $0xd0] sm:$0xff]  ;;  %v63_v42 = vld [vmem:[%s2396_s0 + $0xd8] sm:$0xff]  ;;  %v64_v43 = vld [vmem:[%s2396_s0 + $0xe0] sm:$0xff] }
  0x18   :  { %1531 = vmatmul.mubr.msk.bf16.gmra.mxu0 %vm99_vm0, %v73_v21  ;;  %v65_v44 = vld [vmem:[%s2396_s0 + $0xe8] sm:$0xff]  ;;  %v81_v45 = vpack.c.bf16 %v63_v42, %v62_v41  ;;  %v66_v47 = vld [vmem:[%s2396_s0 + $0xf0] sm:$0xff]  ;;  %v67_v48 = vld [vmem:[%s2396_s0 + $0xf8] sm:$0xff] }
  0x19   :  { %1534 = vmatprep.mubr.msk.bf16.mxu0 %vm99_vm0, %v74_v22  ;;  %v82_v46 = vpack.c.bf16 %v65_v44, %v64_v43  ;;  %v83_v49 = vpack.c.bf16 %v67_v48, %v66_v47  ;;  %v1667_v50 = vld [vmem:[%s2399_s3 + $0x8] sm:$0xff]   ;;  %v1668_v51 = vld [vmem:[%s2399_s3] sm:$0xff]   ;;  %v1669_v52 = vld [vmem:[%s2399_s3 + $0x18] sm:$0xff]  }
  0x1a   :  { %1554 = vmatprep.subr.bf16.mxu1 %v1667_v50  ;;  %v1670_v53 = vld [vmem:[%s2399_s3 + $0x10] sm:$0xff]   ;;  %1590 = vmatprep.subr.bf16.mxu0 %v1669_v52  ;;  %v2136_v55 = vld [vmem:[%s2398_s2] ss:$0 sm:$0xff] }
  0x1b   :  { %1555 = vmatpush3.bf16.msra.mxu1 %v1667_v50  ;;  %1591 = vmatpush3.bf16.msra.mxu0 %v1669_v52 }
  0x1c   :  { %1556 = vmatprep.subr.bf16.mxu1 %v1668_v51  ;;  %1592 = vmatprep.subr.bf16.mxu0 %v1670_v53 }
  0x1f   :  { %1557 = vmatpush3.bf16.msra.mxu1 %v1668_v51  ;;  %1593 = vmatpush3.bf16.msra.mxu0 %v1670_v53 }
  0x20   :  { %1535 = vmatmul.mubr.msk.bf16.gmra.mxu0 %vm99_vm0, %v75_v27 }
  0x21   :  { %1538 = vmatprep.mubr.msk.bf16.mxu0 %vm99_vm0, %v76_v28 }
  0x28   :  { %1539 = vmatmul.mubr.msk.bf16.gmra.mxu0 %vm99_vm0, %v77_v33 }
  0x29   :  { %1542 = vmatprep.mubr.msk.bf16.mxu0 %vm99_vm0, %v78_v34 }
  0x30   :  { %1543 = vmatmul.mubr.msk.bf16.gmra.mxu0 %vm99_vm0, %v79_v39 }
  0x31   :  { %1546 = vmatprep.mubr.msk.bf16.mxu0 %vm99_vm0, %v80_v40 }
  0x38   :  { %1547 = vmatmul.mubr.msk.bf16.gmra.mxu0 %vm99_vm0, %v81_v45 }
  0x39   :  { %1550 = vmatprep.mubr.msk.bf16.mxu0 %vm99_vm0, %v82_v46 }
  0x40   :  { %1551 = vmatmul.mubr.msk.bf16.gmra.mxu0 %vm99_vm0, %v83_v49 }
  0xc8   :  { %v1524_v54 = vpop.f32.mrf.mxu0 }
  0xc9   :  { %v191_v60 = vadd.f32 %v1524_v54, %v2136_v55 }
  0xca   :  { %v182_v56 = vpop.f32.mrf.mxu0 }
  0xcb   :  { %v183_v57 = vadd.f32 %v2136_v55, %v182_v56 }
  0xcc   :  { %v1525_v58 = vpop.f32.mrf.mxu0 }
  0xcd   :  { %v194_v59 = vadd.f32 %v1525_v58, %v2136_v55  ;;  %1673 = vtanh.f32 %v183_v57 }
  0xce   :  { %v185_v61 = vpop.f32.mrf.mxu0 }
  0xcf   :  { %v186_v62 = vadd.f32 %v2136_v55, %v185_v61  ;;  %1675 = vtanh.f32 %v194_v59 }
  0xd0   :  { %v1528_v63 = vpop.f32.mrf.mxu0 }
  0xd1   :  { %1677 = vtanh.f32 %v186_v62  ;;  %v207_v4 = vadd.f32 %v1528_v63, %v2136_v55 }
  0xd2   :  { %1679 = vtanh.f32 %v191_v60  ;;  %v198_v0 = vpop.f32.mrf.mxu0 }
  0xd3   :  { %v199_v1 = vadd.f32 %v2136_v55, %v198_v0 }
  0xd4   :  { %v1529_v2 = vpop.f32.mrf.mxu0 }
  0xd5   :  { %v210_v3 = vadd.f32 %v1529_v2, %v2136_v55  ;;  %1681 = vtanh.f32 %v199_v1 }
  0xd6   :  { %v201_v5 = vpop.f32.mrf.mxu0 }
  0xd7   :  { %v202_v6 = vadd.f32 %v2136_v55, %v201_v5  ;;  %1683 = vtanh.f32 %v210_v3 }
  0xd8   :  { %v1532_v7 = vpop.f32.mrf.mxu0 }
  0xd9   :  { %1685 = vtanh.f32 %v202_v6  ;;  %v223_v15 = vadd.f32 %v1532_v7, %v2136_v55 }
  0xda   :  { %1687 = vtanh.f32 %v207_v4  ;;  %v214_v8 = vpop.f32.mrf.mxu0  ;;  %v1674_v10 = vpop.eup %1673 }
  0xdb   :  { %v215_v9 = vadd.f32 %v2136_v55, %v214_v8 }
  0xdc   :  { %v1533_v11 = vpop.f32.mrf.mxu0  ;;  %v1676_v12 = vpop.eup %1675 }
  0xdd   :  { %v226_v13 = vadd.f32 %v1533_v11, %v2136_v55  ;;  %1689 = vtanh.f32 %v215_v9 }
  0xde   :  { %v1678_v14 = vpop.eup %1677  ;;  %v217_v16 = vpop.f32.mrf.mxu0 }
  0xdf   :  { %v1680_v17 = vpop.eup %1679  ;;  %v218_v18 = vadd.f32 %v2136_v55, %v217_v16  ;;  %v341_v19 = vpack.c.bf16 %v1678_v14, %v1674_v10  ;;  %1691 = vtanh.f32 %v226_v13 }
  0xe0   :  { %v1536_v20 = vpop.f32.mrf.mxu0  ;;  %v342_v21 = vpack.c.bf16 %v1676_v12, %v1680_v17 }
  0xe1   :  { %1693 = vtanh.f32 %v218_v18  ;;  %1558 = vmatprep.mubr.msk.bf16.mxu1 %vm380_vm1, %v341_v19  ;;  %v239_v29 = vadd.f32 %v1536_v20, %v2136_v55 }
  0xe2   :  { %1695 = vtanh.f32 %v223_v15  ;;  %v230_v22 = vpop.f32.mrf.mxu0  ;;  %1559 = vmatmul.mubr.msk.bf16.vlgmr.msra.gmra.mxu1 %vm380_vm1, %v342_v21  ;;  %v1682_v24 = vpop.eup %1681 }
  0xe3   :  { %v231_v23 = vadd.f32 %v2136_v55, %v230_v22 }
  0xe4   :  { %v1537_v25 = vpop.f32.mrf.mxu0  ;;  %v1684_v26 = vpop.eup %1683 }
  0xe5   :  { %v242_v27 = vadd.f32 %v1537_v25, %v2136_v55  ;;  %1697 = vtanh.f32 %v231_v23 }
  0xe6   :  { %v1686_v28 = vpop.eup %1685  ;;  %v233_v30 = vpop.f32.mrf.mxu0 }
  0xe7   :  { %v1688_v31 = vpop.eup %1687  ;;  %v234_v32 = vadd.f32 %v2136_v55, %v233_v30  ;;  %v343_v33 = vpack.c.bf16 %v1686_v28, %v1682_v24  ;;  %1699 = vtanh.f32 %v242_v27 }
  0xe8   :  { %v1540_v34 = vpop.f32.mrf.mxu0  ;;  %v344_v35 = vpack.c.bf16 %v1684_v26, %v1688_v31 }
  0xe9   :  { %1701 = vtanh.f32 %v234_v32  ;;  %1562 = vmatprep.mubr.msk.bf16.mxu1 %vm380_vm1, %v343_v33  ;;  %v255_v43 = vadd.f32 %v1540_v34, %v2136_v55 }
  0xea   :  { %1703 = vtanh.f32 %v239_v29  ;;  %v246_v36 = vpop.f32.mrf.mxu0  ;;  %1563 = vmatmul.mubr.msk.bf16.gmra.mxu1 %vm380_vm1, %v344_v35  ;;  %v1690_v38 = vpop.eup %1689 }
  0xeb   :  { %v247_v37 = vadd.f32 %v2136_v55, %v246_v36 }
  0xec   :  { %v1541_v39 = vpop.f32.mrf.mxu0  ;;  %v1692_v40 = vpop.eup %1691 }
  0xed   :  { %v258_v41 = vadd.f32 %v1541_v39, %v2136_v55  ;;  %1705 = vtanh.f32 %v247_v37  ;;  %v1671_v39 = vld [vmem:[%s2401_s5 + $0x8] sm:$0xff]  }
  0xee   :  { %v1694_v42 = vpop.eup %1693  ;;  %v249_v44 = vpop.f32.mrf.mxu0  ;;  %1626 = vmatprep.subr.bf16.mxu1 %v1671_v39 }
  0xef   :  { %v1696_v45 = vpop.eup %1695  ;;  %v250_v46 = vadd.f32 %v2136_v55, %v249_v44  ;;  %v345_v47 = vpack.c.bf16 %v1694_v42, %v1690_v38  ;;  %1707 = vtanh.f32 %v258_v41  ;;  %1627 = vmatpush3.bf16.msra.mxu1 %v1671_v39  ;;  %v2195_v42 = vld [vmem:[%s2400_s4] ss:$0 sm:$0xff] }
  0xf0   :  { %v1544_v48 = vpop.f32.mrf.mxu0  ;;  %v346_v49 = vpack.c.bf16 %v1692_v40, %v1696_v45  ;;  %v1672_v40 = vld [vmem:[%s2401_s5] sm:$0xff]  }
  0xf1   :  { %1709 = vtanh.f32 %v250_v46  ;;  %1566 = vmatprep.mubr.msk.bf16.mxu1 %vm380_vm1, %v345_v47  ;;  %v271_v58 = vadd.f32 %v1544_v48, %v2136_v55  ;;  %1628 = vmatprep.subr.bf16.mxu1 %v1672_v40 }
  0xf2   :  { %1711 = vtanh.f32 %v255_v43  ;;  %v262_v50 = vpop.f32.mrf.mxu0  ;;  %1567 = vmatmul.mubr.msk.bf16.gmra.mxu1 %vm380_vm1, %v346_v49  ;;  %v1698_v52 = vpop.eup %1697 }
  0xf3   :  { %v263_v51 = vadd.f32 %v2136_v55, %v262_v50  ;;  %1629 = vmatpush3.bf16.msra.mxu1 %v1672_v40 }
  0xf4   :  { %v1545_v53 = vpop.f32.mrf.mxu0  ;;  %v1700_v54 = vpop.eup %1699 }
  0xf5   :  { %v274_v56 = vadd.f32 %v1545_v53, %v2136_v55  ;;  %1713 = vtanh.f32 %v263_v51 }
  0xf6   :  { %v1702_v57 = vpop.eup %1701  ;;  %v265_v59 = vpop.f32.mrf.mxu0 }
  0xf7   :  { %v1704_v60 = vpop.eup %1703  ;;  %v266_v61 = vadd.f32 %v2136_v55, %v265_v59  ;;  %v347_v62 = vpack.c.bf16 %v1702_v57, %v1698_v52  ;;  %1715 = vtanh.f32 %v274_v56 }
  0xf8   :  { %v1548_v63 = vpop.f32.mrf.mxu0  ;;  %v348_v0 = vpack.c.bf16 %v1700_v54, %v1704_v60 }
  0xf9   :  { %1717 = vtanh.f32 %v266_v61  ;;  %1570 = vmatprep.mubr.msk.bf16.mxu1 %vm380_vm1, %v347_v62  ;;  %v287_v8 = vadd.f32 %v1548_v63, %v2136_v55 }
  0xfa   :  { %1719 = vtanh.f32 %v271_v58  ;;  %v278_v1 = vpop.f32.mrf.mxu0  ;;  %1571 = vmatmul.mubr.msk.bf16.gmra.mxu1 %vm380_vm1, %v348_v0  ;;  %v1706_v3 = vpop.eup %1705 }
  0xfb   :  { %v279_v2 = vadd.f32 %v2136_v55, %v278_v1 }
  0xfc   :  { %v1549_v4 = vpop.f32.mrf.mxu0  ;;  %v1708_v5 = vpop.eup %1707 }
  0xfd   :  { %v290_v6 = vadd.f32 %v1549_v4, %v2136_v55  ;;  %1721 = vtanh.f32 %v279_v2 }
  0xfe   :  { %v1710_v7 = vpop.eup %1709  ;;  %v281_v9 = vpop.f32.mrf.mxu0 }
  0xff   :  { %v1712_v10 = vpop.eup %1711  ;;  %v282_v11 = vadd.f32 %v2136_v55, %v281_v9  ;;  %v349_v12 = vpack.c.bf16 %v1710_v7, %v1706_v3  ;;  %1723 = vtanh.f32 %v290_v6 }
 0x100   :  { %v1552_v13 = vpop.f32.mrf.mxu0  ;;  %v350_v14 = vpack.c.bf16 %v1708_v5, %v1712_v10 }
 0x101   :  { %1725 = vtanh.f32 %v282_v11  ;;  %1574 = vmatprep.mubr.msk.bf16.mxu1 %vm380_vm1, %v349_v12  ;;  %v303_v22 = vadd.f32 %v1552_v13, %v2136_v55 }
 0x102   :  { %1727 = vtanh.f32 %v287_v8  ;;  %v294_v15 = vpop.f32.mrf.mxu0  ;;  %1575 = vmatmul.mubr.msk.bf16.gmra.mxu1 %vm380_vm1, %v350_v14  ;;  %v1714_v17 = vpop.eup %1713 }
 0x103   :  { %v295_v16 = vadd.f32 %v2136_v55, %v294_v15 }
 0x104   :  { %v1553_v18 = vpop.f32.mrf.mxu0  ;;  %v1716_v19 = vpop.eup %1715 }
 0x105   :  { %v306_v20 = vadd.f32 %v1553_v18, %v2136_v55  ;;  %1729 = vtanh.f32 %v295_v16 }
 0x106   :  { %v1718_v21 = vpop.eup %1717  ;;  %v297_v23 = vpop.f32.mrf.mxu0 }
 0x107   :  { %v1720_v24 = vpop.eup %1719  ;;  %v298_v25 = vadd.f32 %v2136_v55, %v297_v23  ;;  %v351_v26 = vpack.c.bf16 %v1718_v21, %v1714_v17  ;;  %1731 = vtanh.f32 %v306_v20 }
 0x108   :  { %v352_v27 = vpack.c.bf16 %v1716_v19, %v1720_v24 }
 0x109   :  { %1733 = vtanh.f32 %v298_v25  ;;  %1578 = vmatprep.mubr.msk.bf16.mxu1 %vm380_vm1, %v351_v26 }
 0x10a   :  { %1735 = vtanh.f32 %v303_v22  ;;  %1579 = vmatmul.mubr.msk.bf16.gmra.mxu1 %vm380_vm1, %v352_v27  ;;  %v1722_v28 = vpop.eup %1721 }
 0x10c   :  { %v1724_v29 = vpop.eup %1723 }
 0x10e   :  { %v1726_v30 = vpop.eup %1725 }
 0x10f   :  { %v1728_v31 = vpop.eup %1727  ;;  %v353_v32 = vpack.c.bf16 %v1726_v30, %v1722_v28 }
 0x110   :  { %v354_v33 = vpack.c.bf16 %v1724_v29, %v1728_v31 }
 0x111   :  { %1582 = vmatprep.mubr.msk.bf16.mxu1 %vm380_vm1, %v353_v32 }
 0x112   :  { %1583 = vmatmul.mubr.msk.bf16.gmra.mxu1 %vm380_vm1, %v354_v33  ;;  %v1730_v55 = vpop.eup %1729 }
 0x114   :  { %v1732_v34 = vpop.eup %1731 }
 0x116   :  { %v1734_v35 = vpop.eup %1733 }
 0x117   :  { %v1736_v36 = vpop.eup %1735  ;;  %v355_v37 = vpack.c.bf16 %v1734_v35, %v1730_v55 }
 0x118   :  { %v356_v38 = vpack.c.bf16 %v1732_v34, %v1736_v36 }
 0x119   :  { %1586 = vmatprep.mubr.msk.bf16.mxu1 %vm380_vm1, %v355_v37 }
 0x11a   :  { %1587 = vmatmul.mubr.msk.bf16.gmra.mxu1 %vm380_vm1, %v356_v38 }
 0x1a2   :  { %v1560_v41 = vpop.f32.mrf.mxu1 }
 0x1a3   :  { %v472_v47 = vadd.f32 %v1560_v41, %v2195_v42 }
 0x1a4   :  { %v463_v43 = vpop.f32.mrf.mxu1 }
 0x1a5   :  { %v464_v44 = vadd.f32 %v2195_v42, %v463_v43 }
 0x1a6   :  { %v1561_v45 = vpop.f32.mrf.mxu1 }
 0x1a7   :  { %v475_v46 = vadd.f32 %v1561_v45, %v2195_v42  ;;  %1737 = vtanh.f32 %v464_v44 }
 0x1a8   :  { %v466_v48 = vpop.f32.mrf.mxu1 }
 0x1a9   :  { %v467_v49 = vadd.f32 %v2195_v42, %v466_v48  ;;  %1739 = vtanh.f32 %v475_v46 }
 0x1aa   :  { %v1564_v50 = vpop.f32.mrf.mxu1 }
 0x1ab   :  { %1741 = vtanh.f32 %v467_v49  ;;  %v488_v56 = vadd.f32 %v1564_v50, %v2195_v42 }
 0x1ac   :  { %1743 = vtanh.f32 %v472_v47  ;;  %v479_v51 = vpop.f32.mrf.mxu1 }
 0x1ad   :  { %v480_v52 = vadd.f32 %v2195_v42, %v479_v51 }
 0x1ae   :  { %v1565_v53 = vpop.f32.mrf.mxu1 }
 0x1af   :  { %v491_v54 = vadd.f32 %v1565_v53, %v2195_v42  ;;  %1745 = vtanh.f32 %v480_v52 }
 0x1b0   :  { %v482_v57 = vpop.f32.mrf.mxu1 }
 0x1b1   :  { %v483_v58 = vadd.f32 %v2195_v42, %v482_v57  ;;  %1747 = vtanh.f32 %v491_v54 }
 0x1b2   :  { %v1568_v59 = vpop.f32.mrf.mxu1 }
 0x1b3   :  { %1749 = vtanh.f32 %v483_v58  ;;  %v504_v3 = vadd.f32 %v1568_v59, %v2195_v42 }
 0x1b4   :  { %1751 = vtanh.f32 %v488_v56  ;;  %v495_v60 = vpop.f32.mrf.mxu1  ;;  %v1738_v62 = vpop.eup %1737 }
 0x1b5   :  { %v496_v61 = vadd.f32 %v2195_v42, %v495_v60 }
 0x1b6   :  { %v1569_v63 = vpop.f32.mrf.mxu1  ;;  %v1740_v0 = vpop.eup %1739 }
 0x1b7   :  { %v507_v1 = vadd.f32 %v1569_v63, %v2195_v42  ;;  %1753 = vtanh.f32 %v496_v61 }
 0x1b8   :  { %v1742_v2 = vpop.eup %1741  ;;  %v498_v4 = vpop.f32.mrf.mxu1 }
 0x1b9   :  { %v1744_v5 = vpop.eup %1743  ;;  %v499_v6 = vadd.f32 %v2195_v42, %v498_v4  ;;  %v622_v7 = vpack.c.bf16 %v1742_v2, %v1738_v62  ;;  %1755 = vtanh.f32 %v507_v1 }
 0x1ba   :  { %v623_v8 = vpack.c.bf16 %v1740_v0, %v1744_v5  ;;  %v1572_v9 = vpop.f32.mrf.mxu1 }
 0x1bb   :  { %1757 = vtanh.f32 %v499_v6  ;;  %1594 = vmatprep.mubr.msk.bf16.mxu0 %vm380_vm1, %v622_v7  ;;  %v520_v17 = vadd.f32 %v1572_v9, %v2195_v42 }
 0x1bc   :  { %1759 = vtanh.f32 %v504_v3  ;;  %v511_v10 = vpop.f32.mrf.mxu1  ;;  %1595 = vmatmul.mubr.msk.bf16.vlgmr.msra.gmra.mxu0 %vm380_vm1, %v623_v8  ;;  %v1746_v12 = vpop.eup %1745 }
 0x1bd   :  { %v512_v11 = vadd.f32 %v2195_v42, %v511_v10 }
 0x1be   :  { %v1573_v13 = vpop.f32.mrf.mxu1  ;;  %v1748_v14 = vpop.eup %1747 }
 0x1bf   :  { %v523_v15 = vadd.f32 %v1573_v13, %v2195_v42  ;;  %1761 = vtanh.f32 %v512_v11 }
 0x1c0   :  { %v1750_v16 = vpop.eup %1749  ;;  %v514_v18 = vpop.f32.mrf.mxu1 }
 0x1c1   :  { %v1752_v19 = vpop.eup %1751  ;;  %v515_v20 = vadd.f32 %v2195_v42, %v514_v18  ;;  %v624_v21 = vpack.c.bf16 %v1750_v16, %v1746_v12  ;;  %1763 = vtanh.f32 %v523_v15 }
 0x1c2   :  { %v1576_v22 = vpop.f32.mrf.mxu1  ;;  %v625_v23 = vpack.c.bf16 %v1748_v14, %v1752_v19 }
 0x1c3   :  { %1765 = vtanh.f32 %v515_v20  ;;  %1598 = vmatprep.mubr.msk.bf16.mxu0 %vm380_vm1, %v624_v21  ;;  %v536_v31 = vadd.f32 %v1576_v22, %v2195_v42 }
 0x1c4   :  { %1767 = vtanh.f32 %v520_v17  ;;  %v527_v24 = vpop.f32.mrf.mxu1  ;;  %1599 = vmatmul.mubr.msk.bf16.gmra.mxu0 %vm380_vm1, %v625_v23  ;;  %v1754_v26 = vpop.eup %1753 }
 0x1c5   :  { %v528_v25 = vadd.f32 %v2195_v42, %v527_v24 }
 0x1c6   :  { %v1577_v27 = vpop.f32.mrf.mxu1  ;;  %v1756_v28 = vpop.eup %1755 }
 0x1c7   :  { %v539_v29 = vadd.f32 %v1577_v27, %v2195_v42  ;;  %1769 = vtanh.f32 %v528_v25  ;;  %v1186_v27 = vld [vmem:[%s2403_s7 + $0x10] sm:$0xff] }
 0x1c8   :  { %v1758_v30 = vpop.eup %1757  ;;  %v530_v32 = vpop.f32.mrf.mxu1 }
 0x1c9   :  { %v1760_v33 = vpop.eup %1759  ;;  %v531_v55 = vadd.f32 %v2195_v42, %v530_v32  ;;  %v626_v34 = vpack.c.bf16 %v1758_v30, %v1754_v26  ;;  %1771 = vtanh.f32 %v539_v29  ;;  %v1951_v29 = vmov 0   ;;  %v1187_v30 = vld [vmem:[%s2403_s7 + $0x18] sm:$0xff]  ;;  %v1448_v32 = vld [vmem:[#allocation2] ss:$0 sm:$0xff] }
 0x1ca   :  { %v1580_v35 = vpop.f32.mrf.mxu1  ;;  %v627_v36 = vpack.c.bf16 %v1756_v28, %v1760_v33  ;;  %v1184_v28 = vld [vmem:[%s2403_s7] sm:$0xff]  ;;  %1665 = vset.pattern.permute.xlu1 %v1951_v29  ;;  %1664 = vset.pattern.permute.xlu0 %v1951_v29 }
 0x1cb   :  { %1773 = vtanh.f32 %v531_v55  ;;  %1602 = vmatprep.mubr.msk.bf16.mxu0 %vm380_vm1, %v626_v34  ;;  %v552_v45 = vadd.f32 %v1580_v35, %v2195_v42  ;;  %1200 = vperm.xlu1 %1665, %v1186_v27   ;;  %v2260_v55 = vld [vmem:[%s2400_s4 + $0x1] ss:$0 sm:$0xff] }
 0x1cc   :  { %1775 = vtanh.f32 %v536_v31  ;;  %v543_v37 = vpop.f32.mrf.mxu1  ;;  %1603 = vmatmul.mubr.msk.bf16.gmra.mxu0 %vm380_vm1, %v627_v36  ;;  %v1762_v39 = vpop.eup %1761  ;;  %1190 = vperm.xlu0 %1664, %v1184_v28   ;;  %v1185_v31 = vld [vmem:[%s2403_s7 + $0x8] sm:$0xff] }
 0x1cd   :  { %v544_v38 = vadd.f32 %v2195_v42, %v543_v37 }
 0x1ce   :  { %v1581_v40 = vpop.f32.mrf.mxu1  ;;  %v1764_v41 = vpop.eup %1763 }
 0x1cf   :  { %v555_v43 = vadd.f32 %v1581_v40, %v2195_v42  ;;  %1777 = vtanh.f32 %v544_v38  ;;  %1205 = vperm.xlu1 %1665, %v1187_v30  }
 0x1d0   :  { %v1766_v44 = vpop.eup %1765  ;;  %v546_v46 = vpop.f32.mrf.mxu1  ;;  %1195 = vperm.xlu0 %1664, %v1185_v31  }
 0x1d1   :  { %v1768_v47 = vpop.eup %1767  ;;  %v547_v48 = vadd.f32 %v2195_v42, %v546_v46  ;;  %v628_v49 = vpack.c.bf16 %v1766_v44, %v1762_v39  ;;  %1779 = vtanh.f32 %v555_v43 }
 0x1d2   :  { %v1584_v50 = vpop.f32.mrf.mxu1  ;;  %v629_v51 = vpack.c.bf16 %v1764_v41, %v1768_v47 }
 0x1d3   :  { %1781 = vtanh.f32 %v547_v48  ;;  %1606 = vmatprep.mubr.msk.bf16.mxu0 %vm380_vm1, %v628_v49  ;;  %v568_v60 = vadd.f32 %v1584_v50, %v2195_v42 }
 0x1d4   :  { %1783 = vtanh.f32 %v552_v45  ;;  %v559_v52 = vpop.f32.mrf.mxu1  ;;  %1607 = vmatmul.mubr.msk.bf16.gmra.mxu0 %vm380_vm1, %v629_v51  ;;  %v1770_v54 = vpop.eup %1769  ;;  %1319 = vperm.xlu0 %1664, %v1448_v32  }
 0x1d5   :  { %v560_v53 = vadd.f32 %v2195_v42, %v559_v52 }
 0x1d6   :  { %v1585_v56 = vpop.f32.mrf.mxu1  ;;  %v1772_v57 = vpop.eup %1771 }
 0x1d7   :  { %v571_v58 = vadd.f32 %v1585_v56, %v2195_v42  ;;  %1785 = vtanh.f32 %v560_v53 }
 0x1d8   :  { %v1774_v59 = vpop.eup %1773  ;;  %v562_v61 = vpop.f32.mrf.mxu1 }
 0x1d9   :  { %v1776_v62 = vpop.eup %1775  ;;  %v563_v63 = vadd.f32 %v2195_v42, %v562_v61  ;;  %v630_v0 = vpack.c.bf16 %v1774_v59, %v1770_v54  ;;  %1787 = vtanh.f32 %v571_v58 }
 0x1da   :  { %v1588_v1 = vpop.f32.mrf.mxu1  ;;  %v631_v2 = vpack.c.bf16 %v1772_v57, %v1776_v62 }
 0x1db   :  { %1789 = vtanh.f32 %v563_v63  ;;  %1610 = vmatprep.mubr.msk.bf16.mxu0 %vm380_vm1, %v630_v0  ;;  %v584_v10 = vadd.f32 %v1588_v1, %v2195_v42 }
 0x1dc   :  { %1791 = vtanh.f32 %v568_v60  ;;  %v575_v3 = vpop.f32.mrf.mxu1  ;;  %1611 = vmatmul.mubr.msk.bf16.gmra.mxu0 %vm380_vm1, %v631_v2  ;;  %v1778_v5 = vpop.eup %1777 }
 0x1dd   :  { %v576_v4 = vadd.f32 %v2195_v42, %v575_v3 }
 0x1de   :  { %v1589_v6 = vpop.f32.mrf.mxu1  ;;  %v1780_v7 = vpop.eup %1779 }
 0x1df   :  { %v587_v8 = vadd.f32 %v1589_v6, %v2195_v42  ;;  %1793 = vtanh.f32 %v576_v4 }
 0x1e0   :  { %v1782_v9 = vpop.eup %1781  ;;  %v578_v11 = vpop.f32.mrf.mxu1 }
 0x1e1   :  { %v1784_v12 = vpop.eup %1783  ;;  %v579_v13 = vadd.f32 %v2195_v42, %v578_v11  ;;  %v632_v14 = vpack.c.bf16 %v1782_v9, %v1778_v5  ;;  %1795 = vtanh.f32 %v587_v8 }
 0x1e2   :  { %v633_v15 = vpack.c.bf16 %v1780_v7, %v1784_v12 }
 0x1e3   :  { %1797 = vtanh.f32 %v579_v13  ;;  %1614 = vmatprep.mubr.msk.bf16.mxu0 %vm380_vm1, %v632_v14 }
 0x1e4   :  { %1799 = vtanh.f32 %v584_v10  ;;  %1615 = vmatmul.mubr.msk.bf16.gmra.mxu0 %vm380_vm1, %v633_v15  ;;  %v1786_v16 = vpop.eup %1785 }
 0x1e6   :  { %v1788_v17 = vpop.eup %1787 }
 0x1e8   :  { %v1790_v18 = vpop.eup %1789 }
 0x1e9   :  { %v1792_v19 = vpop.eup %1791  ;;  %v634_v20 = vpack.c.bf16 %v1790_v18, %v1786_v16 }
 0x1ea   :  { %v635_v21 = vpack.c.bf16 %v1788_v17, %v1792_v19 }
 0x1eb   :  { %1618 = vmatprep.mubr.msk.bf16.mxu0 %vm380_vm1, %v634_v20 }
 0x1ec   :  { %1619 = vmatmul.mubr.msk.bf16.gmra.mxu0 %vm380_vm1, %v635_v21  ;;  %v1794_v42 = vpop.eup %1793 }
 0x1ee   :  { %v1796_v22 = vpop.eup %1795 }
 0x1f0   :  { %v1798_v23 = vpop.eup %1797 }
 0x1f1   :  { %v1800_v24 = vpop.eup %1799  ;;  %v636_v25 = vpack.c.bf16 %v1798_v23, %v1794_v42 }
 0x1f2   :  { %v637_v26 = vpack.c.bf16 %v1796_v22, %v1800_v24 }
 0x1f3   :  { %1622 = vmatprep.mubr.msk.bf16.mxu0 %vm380_vm1, %v636_v25 }
 0x1f4   :  { %1623 = vmatmul.mubr.msk.bf16.gmra.mxu0 %vm380_vm1, %v637_v26 }
 0x27c   :  { %v1596_v33 = vpop.f32.mrf.mxu0 }
 0x27d   :  { %v754_v38 = vadd.f32 %v1596_v33, %v2260_v55 }
 0x27e   :  { %v745_v34 = vpop.f32.mrf.mxu0 }
 0x27f   :  { %v746_v35 = vadd.f32 %v2260_v55, %v745_v34 }
 0x280   :  { %v1597_v36 = vpop.f32.mrf.mxu0 }
 0x281   :  { %v757_v37 = vadd.f32 %v1597_v36, %v2260_v55  ;;  %1801 = vtanh.f32 %v746_v35 }
 0x282   :  { %v748_v39 = vpop.f32.mrf.mxu0 }
 0x283   :  { %v749_v40 = vadd.f32 %v2260_v55, %v748_v39  ;;  %1803 = vtanh.f32 %v757_v37 }
 0x284   :  { %v1600_v41 = vpop.f32.mrf.mxu0 }
 0x285   :  { %1805 = vtanh.f32 %v749_v40  ;;  %v770_v47 = vadd.f32 %v1600_v41, %v2260_v55 }
 0x286   :  { %1807 = vtanh.f32 %v754_v38  ;;  %v761_v43 = vpop.f32.mrf.mxu0 }
 0x287   :  { %v762_v44 = vadd.f32 %v2260_v55, %v761_v43 }
 0x288   :  { %v1601_v45 = vpop.f32.mrf.mxu0 }
 0x289   :  { %v773_v46 = vadd.f32 %v1601_v45, %v2260_v55  ;;  %1809 = vtanh.f32 %v762_v44 }
 0x28a   :  { %v764_v48 = vpop.f32.mrf.mxu0 }
 0x28b   :  { %v765_v49 = vadd.f32 %v2260_v55, %v764_v48  ;;  %1811 = vtanh.f32 %v773_v46 }
 0x28c   :  { %v1604_v50 = vpop.f32.mrf.mxu0 }
 0x28d   :  { %1813 = vtanh.f32 %v765_v49  ;;  %v786_v59 = vadd.f32 %v1604_v50, %v2260_v55 }
 0x28e   :  { %1815 = vtanh.f32 %v770_v47  ;;  %v777_v51 = vpop.f32.mrf.mxu0  ;;  %v1802_v53 = vpop.eup %1801 }
 0x28f   :  { %v778_v52 = vadd.f32 %v2260_v55, %v777_v51 }
 0x290   :  { %v1605_v54 = vpop.f32.mrf.mxu0  ;;  %v1804_v56 = vpop.eup %1803 }
 0x291   :  { %v789_v57 = vadd.f32 %v1605_v54, %v2260_v55  ;;  %1817 = vtanh.f32 %v778_v52 }
 0x292   :  { %v1806_v58 = vpop.eup %1805  ;;  %v780_v60 = vpop.f32.mrf.mxu0 }
 0x293   :  { %v1808_v61 = vpop.eup %1807  ;;  %v781_v62 = vadd.f32 %v2260_v55, %v780_v60  ;;  %v904_v63 = vpack.c.bf16 %v1806_v58, %v1802_v53  ;;  %1819 = vtanh.f32 %v789_v57 }
 0x294   :  { %v905_v0 = vpack.c.bf16 %v1804_v56, %v1808_v61  ;;  %v1608_v1 = vpop.f32.mrf.mxu0 }
 0x295   :  { %1821 = vtanh.f32 %v781_v62  ;;  %1630 = vmatprep.mubr.msk.bf16.mxu1 %vm380_vm1, %v904_v63  ;;  %v802_v9 = vadd.f32 %v1608_v1, %v2260_v55 }
 0x296   :  { %1823 = vtanh.f32 %v786_v59  ;;  %v793_v2 = vpop.f32.mrf.mxu0  ;;  %1631 = vmatmul.mubr.msk.bf16.vlgmr.msra.gmra.mxu1 %vm380_vm1, %v905_v0  ;;  %v1810_v4 = vpop.eup %1809 }
 0x297   :  { %v794_v3 = vadd.f32 %v2260_v55, %v793_v2 }
 0x298   :  { %v1609_v5 = vpop.f32.mrf.mxu0  ;;  %v1812_v6 = vpop.eup %1811 }
 0x299   :  { %v805_v7 = vadd.f32 %v1609_v5, %v2260_v55  ;;  %1825 = vtanh.f32 %v794_v3 }
 0x29a   :  { %v1814_v8 = vpop.eup %1813  ;;  %v796_v10 = vpop.f32.mrf.mxu0 }
 0x29b   :  { %v1816_v11 = vpop.eup %1815  ;;  %v797_v12 = vadd.f32 %v2260_v55, %v796_v10  ;;  %v906_v13 = vpack.c.bf16 %v1814_v8, %v1810_v4  ;;  %1827 = vtanh.f32 %v805_v7 }
 0x29c   :  { %v1612_v14 = vpop.f32.mrf.mxu0  ;;  %v907_v15 = vpack.c.bf16 %v1812_v6, %v1816_v11 }
 0x29d   :  { %1829 = vtanh.f32 %v797_v12  ;;  %1634 = vmatprep.mubr.msk.bf16.mxu1 %vm380_vm1, %v906_v13  ;;  %v818_v22 = vadd.f32 %v1612_v14, %v2260_v55 }
 0x29e   :  { %1831 = vtanh.f32 %v802_v9  ;;  %v809_v16 = vpop.f32.mrf.mxu0  ;;  %1635 = vmatmul.mubr.msk.bf16.gmra.mxu1 %vm380_vm1, %v907_v15  ;;  %v1818_v18 = vpop.eup %1817 }
 0x29f   :  { %v810_v17 = vadd.f32 %v2260_v55, %v809_v16 }
 0x2a0   :  { %v1613_v19 = vpop.f32.mrf.mxu0  ;;  %v1820_v20 = vpop.eup %1819 }
 0x2a1   :  { %v821_v21 = vadd.f32 %v1613_v19, %v2260_v55  ;;  %1833 = vtanh.f32 %v810_v17 }
 0x2a2   :  { %v1822_v42 = vpop.eup %1821  ;;  %v812_v23 = vpop.f32.mrf.mxu0 }
 0x2a3   :  { %v1824_v24 = vpop.eup %1823  ;;  %v813_v25 = vadd.f32 %v2260_v55, %v812_v23  ;;  %v908_v26 = vpack.c.bf16 %v1822_v42, %v1818_v18  ;;  %1835 = vtanh.f32 %v821_v21 }
 0x2a4   :  { %v1616_v27 = vpop.f32.mrf.mxu0  ;;  %v909_v28 = vpack.c.bf16 %v1820_v20, %v1824_v24 }
 0x2a5   :  { %1837 = vtanh.f32 %v813_v25  ;;  %1638 = vmatprep.mubr.msk.bf16.mxu1 %vm380_vm1, %v908_v26  ;;  %v834_v36 = vadd.f32 %v1616_v27, %v2260_v55 }
 0x2a6   :  { %1839 = vtanh.f32 %v818_v22  ;;  %v825_v29 = vpop.f32.mrf.mxu0  ;;  %1639 = vmatmul.mubr.msk.bf16.gmra.mxu1 %vm380_vm1, %v909_v28  ;;  %v1826_v31 = vpop.eup %1825  ;;  %v2313_v28 = vld [vmem:[%s2402_s6] ss:$0 sm:$0xff]  ;;  %s1952_s6 = smov [#allocation3]  }
 0x2a7   :  { %v826_v30 = vadd.f32 %v2260_v55, %v825_v29  ;;  %s1360_s28 = sshll.u32 %s1952_s6, 4  ;;  %s1361_s28 = int_to_ptr.vmem [resolvable:$true] %s1360_s28 }
 0x2a8   :  { %v1617_v32 = vpop.f32.mrf.mxu0  ;;  %v1828_v33 = vpop.eup %1827  ;;  %s1929_s29 = scalar_lea.vmem %s1361_s28, 128  ;;  %p1934_p1 = scmp.lt.s32.totalorder %s1361_s28, %s1361_s28 }
 0x2a9   :  { %v837_v34 = vadd.f32 %v1617_v32, %v2260_v55  ;;  %1841 = vtanh.f32 %v826_v30  ;;  %p1930_p0 = scmp.ne.s32.totalorder %s1361_s28, %s1929_s29  ;;  %p1935_p2 = scmp.lt.s32.totalorder %s1929_s29, %s1929_s29 }
 0x2aa   :  { %v1830_v35 = vpop.eup %1829  ;;  %v828_v37 = vpop.f32.mrf.mxu0 }
 0x2ab   :  { %v1832_v38 = vpop.eup %1831  ;;  %v829_v39 = vadd.f32 %v2260_v55, %v828_v37  ;;  %v910_v40 = vpack.c.bf16 %v1830_v35, %v1826_v31  ;;  %1843 = vtanh.f32 %v837_v34  ;;  %p1936_p3 = por %p1935_p2, %p1934_p1 }
 0x2ac   :  { %v1620_v41 = vpop.f32.mrf.mxu0  ;;  %v911_v43 = vpack.c.bf16 %v1828_v33, %v1832_v38 }
 0x2ad   :  { %1845 = vtanh.f32 %v829_v39  ;;  %1642 = vmatprep.mubr.msk.bf16.mxu1 %vm380_vm1, %v910_v40  ;;  %v850_v51 = vadd.f32 %v1620_v41, %v2260_v55  ;;  %p1937_p4 = pnand %p1936_p3, %p1930_p0 }
 0x2ae   :  { %1847 = vtanh.f32 %v834_v36  ;;  %v841_v44 = vpop.f32.mrf.mxu0  ;;  %1643 = vmatmul.mubr.msk.bf16.gmra.mxu1 %vm380_vm1, %v911_v43  ;;  %v1834_v46 = vpop.eup %1833 }
 0x2af   :  { %v842_v45 = vadd.f32 %v2260_v55, %v841_v44 }
 0x2b0   :  { %v1621_v47 = vpop.f32.mrf.mxu0  ;;  %v1836_v48 = vpop.eup %1835 }
 0x2b1   :  { %v853_v49 = vadd.f32 %v1621_v47, %v2260_v55  ;;  %1849 = vtanh.f32 %v842_v45 }
 0x2b2   :  { %v1838_v50 = vpop.eup %1837  ;;  %v844_v52 = vpop.f32.mrf.mxu0 }
 0x2b3   :  { %v1840_v53 = vpop.eup %1839  ;;  %v845_v54 = vadd.f32 %v2260_v55, %v844_v52  ;;  %v912_v56 = vpack.c.bf16 %v1838_v50, %v1834_v46  ;;  %1851 = vtanh.f32 %v853_v49 }
 0x2b4   :  { %v1624_v57 = vpop.f32.mrf.mxu0  ;;  %v913_v58 = vpack.c.bf16 %v1836_v48, %v1840_v53 }
 0x2b5   :  { %1853 = vtanh.f32 %v845_v54  ;;  %1646 = vmatprep.mubr.msk.bf16.mxu1 %vm380_vm1, %v912_v56  ;;  %v866_v2 = vadd.f32 %v1624_v57, %v2260_v55 }
 0x2b6   :  { %1855 = vtanh.f32 %v850_v51  ;;  %v857_v59 = vpop.f32.mrf.mxu0  ;;  %1647 = vmatmul.mubr.msk.bf16.gmra.mxu1 %vm380_vm1, %v913_v58  ;;  %v1842_v61 = vpop.eup %1841 }
 0x2b7   :  { %v858_v60 = vadd.f32 %v2260_v55, %v857_v59 }
 0x2b8   :  { %v1625_v62 = vpop.f32.mrf.mxu0  ;;  %v1844_v63 = vpop.eup %1843 }
 0x2b9   :  { %v869_v0 = vadd.f32 %v1625_v62, %v2260_v55  ;;  %1857 = vtanh.f32 %v858_v60  ;;  %v2335_v62 = vpop.permute.xlu0 %1190 }
 0x2ba   :  { %v1846_v1 = vpop.eup %1845  ;;  %v860_v3 = vpop.f32.mrf.mxu0 }
 0x2bb   :  { %v1848_v4 = vpop.eup %1847  ;;  %v861_v5 = vadd.f32 %v2260_v55, %v860_v3  ;;  %v914_v6 = vpack.c.bf16 %v1846_v1, %v1842_v61  ;;  %1859 = vtanh.f32 %v869_v0 }
 0x2bc   :  { %v915_v7 = vpack.c.bf16 %v1844_v63, %v1848_v4 }
 0x2bd   :  { %1861 = vtanh.f32 %v861_v5  ;;  %1650 = vmatprep.mubr.msk.bf16.mxu1 %vm380_vm1, %v914_v6 }
 0x2be   :  { %1863 = vtanh.f32 %v866_v2  ;;  %1651 = vmatmul.mubr.msk.bf16.gmra.mxu1 %vm380_vm1, %v915_v7  ;;  %v1850_v8 = vpop.eup %1849 }
 0x2c0   :  { %v1852_v9 = vpop.eup %1851 }
 0x2c2   :  { %v1854_v10 = vpop.eup %1853 }
 0x2c3   :  { %v1856_v11 = vpop.eup %1855  ;;  %v916_v12 = vpack.c.bf16 %v1854_v10, %v1850_v8 }
 0x2c4   :  { %v917_v13 = vpack.c.bf16 %v1852_v9, %v1856_v11 }
 0x2c5   :  { %1654 = vmatprep.mubr.msk.bf16.mxu1 %vm380_vm1, %v916_v12  ;;  %v2343_v12 = vpop.permute.xlu0 %1195 }
 0x2c6   :  { %1655 = vmatmul.mubr.msk.bf16.gmra.mxu1 %vm380_vm1, %v917_v13  ;;  %v1858_v55 = vpop.eup %1857 }
 0x2c8   :  { %v1860_v14 = vpop.eup %1859 }
 0x2ca   :  { %v1862_v15 = vpop.eup %1861 }
 0x2cb   :  { %v1864_v16 = vpop.eup %1863  ;;  %v918_v17 = vpack.c.bf16 %v1862_v15, %v1858_v55 }
 0x2cc   :  { %v919_v18 = vpack.c.bf16 %v1860_v14, %v1864_v16 }
 0x2cd   :  { %1658 = vmatprep.mubr.msk.bf16.mxu1 %vm380_vm1, %v918_v17 }
 0x2ce   :  { %1659 = vmatmul.mubr.msk.bf16.gmra.mxu1 %vm380_vm1, %v919_v18 }
 0x356   :  { %v1632_v19 = vpop.f32.mrf.mxu1 }
 0x357   :  { %v1034_v31 = vadd.f32 %v1632_v19, %v2313_v28 }
 0x358   :  { %v1025_v20 = vpop.f32.mrf.mxu1 }
 0x359   :  { %v1026_v32 = vadd.f32 %v2313_v28, %v1025_v20  ;;  %1865 = vtanh.f32 %v1034_v31 }
 0x35a   :  { %v1633_v21 = vpop.f32.mrf.mxu1 }
 0x35b   :  { %v1037_v34 = vadd.f32 %v1633_v21, %v2313_v28  ;;  %1867 = vtanh.f32 %v1026_v32 }
 0x35c   :  { %v1028_v42 = vpop.f32.mrf.mxu1 }
 0x35d   :  { %v1029_v35 = vadd.f32 %v2313_v28, %v1028_v42  ;;  %1869 = vtanh.f32 %v1037_v34 }
 0x35e   :  { %v1636_v22 = vpop.f32.mrf.mxu1 }
 0x35f   :  { %v1050_v37 = vadd.f32 %v1636_v22, %v2313_v28  ;;  %1871 = vtanh.f32 %v1029_v35 }
 0x360   :  { %v1041_v23 = vpop.f32.mrf.mxu1 }
 0x361   :  { %v1042_v38 = vadd.f32 %v2313_v28, %v1041_v23  ;;  %1873 = vtanh.f32 %v1050_v37  ;;  %v2350_v23 = vpop.permute.xlu1 %1200 }
 0x362   :  { %v1637_v24 = vpop.f32.mrf.mxu1 }
 0x363   :  { %v1053_v40 = vadd.f32 %v1637_v24, %v2313_v28  ;;  %1875 = vtanh.f32 %v1042_v38 }
 0x364   :  { %v1044_v25 = vpop.f32.mrf.mxu1 }
 0x365   :  { %v1045_v41 = vadd.f32 %v2313_v28, %v1044_v25  ;;  %1877 = vtanh.f32 %v1053_v40 }
 0x366   :  { %v1640_v26 = vpop.f32.mrf.mxu1  ;;  %v2332_v58 = vpop.eup %1865 }
 0x367   :  { %1879 = vtanh.f32 %v1045_v41  ;;  %v1066_v50 = vadd.f32 %v1640_v26, %v2313_v28 }
 0x368   :  { %v1057_v27 = vpop.f32.mrf.mxu1  ;;  %v1868_v61 = vpop.eup %1867 }
 0x369   :  { %v1058_v44 = vadd.f32 %v2313_v28, %v1057_v27  ;;  %v1208_v24 = vmul.f32 %v1868_v61, %v2335_v62 }
 0x36a   :  { %v1641_v29 = vpop.f32.mrf.mxu1  ;;  %v2338_v0 = vpop.eup %1869 }
 0x36b   :  { %1881 = vtanh.f32 %v1058_v44  ;;  %v1069_v53 = vadd.f32 %v1641_v29, %v2313_v28 }
 0x36c   :  { %v1060_v30 = vpop.f32.mrf.mxu1  ;;  %v1872_v2 = vpop.eup %1871 }
 0x36d   :  { %v1061_v45 = vadd.f32 %v2313_v28, %v1060_v30  ;;  %v1209_v18 = vmul.f32 %v1872_v2, %v2343_v12 }
 0x36e   :  { %v1644_v33 = vpop.f32.mrf.mxu1  ;;  %v1874_v5 = vpop.eup %1873 }
 0x36f   :  { %1883 = vtanh.f32 %v1061_v45  ;;  %v1082_v56 = vadd.f32 %v1644_v33, %v2313_v28  ;;  %v1240_v34 = vadd.f32 %v1209_v18, %v1208_v24  ;;  %v1214_v44 = vmul.f32 %v1874_v5, %v2350_v23 }
 0x370   :  { %v1073_v36 = vpop.f32.mrf.mxu1  ;;  %v1876_v8 = vpop.eup %1875 }
 0x371   :  { %v1074_v48 = vadd.f32 %v2313_v28, %v1073_v36  ;;  %v1212_v25 = vmul.f32 %v1876_v8, %v2335_v62 }
 0x372   :  { %v1645_v39 = vpop.f32.mrf.mxu1  ;;  %v1878_v9 = vpop.eup %1877 }
 0x373   :  { %v1085_v63 = vadd.f32 %v1645_v39, %v2313_v28 }
 0x374   :  { %v1076_v43 = vpop.f32.mrf.mxu1  ;;  %v1880_v11 = vpop.eup %1879 }
 0x375   :  { %v1077_v47 = vadd.f32 %v2313_v28, %v1076_v43  ;;  %v1213_v19 = vmul.f32 %v1880_v11, %v2343_v12 }
 0x376   :  { %v1648_v46 = vpop.f32.mrf.mxu1 }
 0x377   :  { %1885 = vtanh.f32 %v1077_v47  ;;  %v1098_v59 = vadd.f32 %v1648_v46, %v2313_v28  ;;  %v1249_v35 = vadd.f32 %v1213_v19, %v1212_v25 }
 0x378   :  { %v1089_v49 = vpop.f32.mrf.mxu1  ;;  %1887 = vtanh.f32 %v1074_v48  ;;  %v1882_v14 = vpop.eup %1881 }
 0x379   :  { %v1090_v51 = vadd.f32 %v2313_v28, %v1089_v49  ;;  %1889 = vtanh.f32 %v1066_v50  ;;  %v1216_v33 = vmul.f32 %v1882_v14, %v2335_v62  ;;  %v1210_v49 = vmul.f32 %v2332_v58, %v2350_v23 }
 0x37a   :  { %v1649_v52 = vpop.f32.mrf.mxu1 }
 0x37b   :  { %1891 = vtanh.f32 %v1090_v51  ;;  %v1101_v3 = vadd.f32 %v1649_v52, %v2313_v28 }
 0x37c   :  { %v1092_v54 = vpop.f32.mrf.mxu1  ;;  %v1884_v16 = vpop.eup %1883 }
 0x37d   :  { %v1093_v57 = vadd.f32 %v2313_v28, %v1092_v54  ;;  %v1217_v26 = vmul.f32 %v1884_v16, %v2343_v12  ;;  %v1250_v54 = vadd.f32 %v1249_v35, %v1214_v44 }
 0x37e   :  { %v1652_v60 = vpop.f32.mrf.mxu1 }
 0x37f   :  { %1893 = vtanh.f32 %v1093_v57  ;;  %v1114_v6 = vadd.f32 %v1652_v60, %v2313_v28  ;;  %v1258_v45 = vadd.f32 %v1217_v26, %v1216_v33  ;;  %v1241_v60 = vadd.f32 %v1240_v34, %v1210_v49 }
 0x380   :  { %1895 = vtanh.f32 %v1069_v53  ;;  %v1105_v1 = vpop.f32.mrf.mxu1  ;;  %v2367_v53 = vpop.permute.xlu1 %1205 }
 0x381   :  { %1897 = vtanh.f32 %v1082_v56  ;;  %v1106_v4 = vadd.f32 %v2313_v28, %v1105_v1  ;;  %v1215_v58 = vmul.f32 %v1878_v9, %v2367_v53 }
 0x382   :  { %1899 = vtanh.f32 %v1098_v59  ;;  %v1653_v7 = vpop.f32.mrf.mxu1 }
 0x383   :  { %1901 = vtanh.f32 %v1085_v63  ;;  %v1117_v13 = vadd.f32 %v1653_v7, %v2313_v28  ;;  %v1211_v7 = vmul.f32 %v2338_v0, %v2367_v53  ;;  %v1251_v14 = vadd.f32 %v1250_v54, %v1215_v58 }
 0x384   :  { %1903 = vtanh.f32 %v1106_v4  ;;  %v1108_v10 = vpop.f32.mrf.mxu1  ;;  %v1886_v17 = vpop.eup %1885 }
 0x385   :  { %1905 = vtanh.f32 %v1101_v3  ;;  %v1109_v55 = vadd.f32 %v2313_v28, %v1108_v10  ;;  %v1888_v21 = vpop.eup %1887  ;;  %v1221_v31 = vmul.f32 %v1886_v17, %v2343_v12  ;;  %v1252_v26 = vrot.slane %v1251_v14, 4 }
 0x386   :  { %1907 = vtanh.f32 %v1114_v6  ;;  %v1656_v15 = vpop.f32.mrf.mxu1  ;;  %v1890_v22 = vpop.eup %1889  ;;  %v1220_v36 = vmul.f32 %v1888_v21, %v2335_v62  ;;  %v1242_v21 = vadd.f32 %v1241_v60, %v1211_v7 }
 0x387   :  { %1909 = vtanh.f32 %v1109_v55  ;;  %v1130_v27 = vadd.f32 %v1656_v15, %v2313_v28  ;;  %v1218_v52 = vmul.f32 %v1890_v22, %v2350_v23 }
 0x388   :  { %v1121_v20 = vpop.f32.mrf.mxu1  ;;  %1911 = vtanh.f32 %v1117_v13  ;;  %v1892_v30 = vpop.eup %1891  ;;  %v1267_v50 = vadd.f32 %v1221_v31, %v1220_v36  ;;  %v1253_v36 = vadd.f32 %v1252_v26, %v1251_v14 }
 0x389   :  { %v1122_v42 = vadd.f32 %v2313_v28, %v1121_v20  ;;  %v1224_v46 = vmul.f32 %v1892_v30, %v2335_v62  ;;  %v1259_v2 = vadd.f32 %v1258_v45, %v1218_v52 }
 0x38a   :  { %v1657_v29 = vpop.f32.mrf.mxu1 }
 0x38b   :  { %1913 = vtanh.f32 %v1122_v42  ;;  %v1133_v40 = vadd.f32 %v1657_v29, %v2313_v28 }
 0x38c   :  { %v1894_v32 = vpop.eup %1893  ;;  %v1124_v37 = vpop.f32.mrf.mxu1  ;;  %1915 = vtanh.f32 %v1130_v27 }
 0x38d   :  { %v1896_v38 = vpop.eup %1895  ;;  %v1225_v39 = vmul.f32 %v1894_v32, %v2343_v12  ;;  %v1125_v41 = vadd.f32 %v2313_v28, %v1124_v37 }
 0x38e   :  { %v1898_v43 = vpop.eup %1897  ;;  %v1660_v47 = vpop.f32.mrf.mxu1  ;;  %v1219_v8 = vmul.f32 %v1896_v38, %v2367_v53 }
 0x38f   :  { %v1900_v48 = vpop.eup %1899  ;;  %1917 = vtanh.f32 %v1125_v41  ;;  %v1276_v56 = vadd.f32 %v1225_v39, %v1224_v46  ;;  %v1222_v61 = vmul.f32 %v1898_v43, %v2350_v23  ;;  %v1146_v4 = vadd.f32 %v1660_v47, %v2313_v28 }
 0x390   :  { %v1902_v51 = vpop.eup %1901  ;;  %v1137_v57 = vpop.f32.mrf.mxu1  ;;  %1919 = vtanh.f32 %v1133_v40  ;;  %v1226_v3 = vmul.f32 %v1900_v48, %v2350_v23  ;;  %v1260_v0 = vadd.f32 %v1259_v2, %v1219_v8  ;;  %v1254_v48 = vrot.slane %v1253_v36, 2 }
 0x391   :  { %v1904_v59 = vpop.eup %1903  ;;  %v1138_v63 = vadd.f32 %v2313_v28, %v1137_v57  ;;  %v1268_v10 = vadd.f32 %v1267_v50, %v1222_v61  ;;  %v1223_v13 = vmul.f32 %v1902_v51, %v2367_v53 }
 0x392   :  { %v1906_v1 = vpop.eup %1905  ;;  %v1661_v5 = vpop.f32.mrf.mxu1  ;;  %v1277_v55 = vadd.f32 %v1276_v56, %v1226_v3  ;;  %v1228_v9 = vmul.f32 %v1904_v59, %v2335_v62  ;;  %v1261_v31 = vrot.slane %v1260_v0, 4 }
 0x393   :  { %v1908_v6 = vpop.eup %1907  ;;  %1921 = vtanh.f32 %v1138_v63  ;;  %v1149_v17 = vadd.f32 %v1661_v5, %v2313_v28  ;;  %v1227_v20 = vmul.f32 %v1906_v1, %v2367_v53  ;;  %v1269_v42 = vadd.f32 %v1268_v10, %v1223_v13 }
 0x394   :  { %v1910_v11 = vpop.eup %1909  ;;  %v1140_v15 = vpop.f32.mrf.mxu1  ;;  %1923 = vtanh.f32 %v1146_v4  ;;  %v1230_v22 = vmul.f32 %v1908_v6, %v2350_v23  ;;  %v1262_v44 = vadd.f32 %v1261_v31, %v1260_v0  ;;  %v1255_v1 = vadd.f32 %v1254_v48, %v1253_v36 }
 0x395   :  { %v1229_v16 = vmul.f32 %v1910_v11, %v2343_v12  ;;  %v1141_v18 = vadd.f32 %v2313_v28, %v1140_v15  ;;  %v1912_v19 = vpop.eup %1911  ;;  %v1278_v25 = vadd.f32 %v1277_v55, %v1227_v20  ;;  %v1243_v28 = vrot.slane %v1242_v21, 4 }
 0x396   :  { %v1231_v27 = vmul.f32 %v1912_v19, %v2367_v53  ;;  %v1270_v33 = vrot.slane %v1269_v42, 4  ;;  %v1263_v57 = vrot.slane %v1262_v44, 2  ;;  %v1256_v14 = vrot.slane %v1255_v1, 1 }
 0x397   :  { %v1285_v24 = vadd.f32 %v1229_v16, %v1228_v9  ;;  %1925 = vtanh.f32 %v1141_v18  ;;  %v1279_v37 = vrot.slane %v1278_v25, 4  ;;  %v1244_v43 = vadd.f32 %v1243_v28, %v1242_v21 }
 0x398   :  { %1927 = vtanh.f32 %v1149_v17  ;;  %v1914_v30 = vpop.eup %1913  ;;  %v1271_v47 = vadd.f32 %v1270_v33, %v1269_v42  ;;  %v1264_v8 = vadd.f32 %v1263_v57, %v1262_v44  ;;  %v1257_v42 = vadd.f32 %v1256_v14, %v1255_v1 }
 0x399   :  { %v1286_v29 = vadd.f32 %v1285_v24, %v1230_v22  ;;  %v1916_v32 = vpop.eup %1915  ;;  %v1232_v38 = vmul.f32 %v1914_v30, %v2335_v62  ;;  %v1280_v49 = vadd.f32 %v1279_v37, %v1278_v25  ;;  %v1245_v56 = vrot.slane %v1244_v43, 2  ;;  %v1320_v30 = vpop.permute.xlu0 %1319 }
 0x39a   :  { %v1234_v45 = vmul.f32 %v1916_v32, %v2350_v23  ;;  %v1272_v60 = vrot.slane %v1271_v47, 2 }
 0x39b   :  { %v1287_v34 = vadd.f32 %v1286_v29, %v1231_v27  ;;  %v1281_v58 = vrot.slane %v1280_v49, 2  ;;  %v1246_v7 = vadd.f32 %v1245_v56, %v1244_v43 }
 0x39c   :  { %v1918_v35 = vpop.eup %1917  ;;  %v1273_v13 = vadd.f32 %v1272_v60, %v1271_v47 }
 0x39d   :  { %v1233_v39 = vmul.f32 %v1918_v35, %v2343_v12  ;;  %v1288_v40 = vrot.slane %v1287_v34, 4  ;;  %v1920_v41 = vpop.eup %1919  ;;  %v1282_v9 = vadd.f32 %v1281_v58, %v1280_v49  ;;  %v1247_v19 = vrot.slane %v1246_v7, 1 }
 0x39e   :  { %v1235_v50 = vmul.f32 %v1920_v41, %v2367_v53 }
 0x39f   :  { %v1294_v46 = vadd.f32 %v1233_v39, %v1232_v38  ;;  %v1289_v51 = vadd.f32 %v1288_v40, %v1287_v34  ;;  %v1283_v21 = vrot.slane %v1282_v9, 1  ;;  %v1248_v26 = vadd.f32 %v1247_v19, %v1246_v7 }
 0x3a0   :  { %v1922_v54 = vpop.eup %1921 }
 0x3a1   :  { %v1295_v52 = vadd.f32 %v1294_v46, %v1234_v45  ;;  %v1924_v59 = vpop.eup %1923  ;;  %v1236_v2 = vmul.f32 %v1922_v54, %v2335_v62  ;;  %v1290_v4 = vrot.slane %v1289_v51, 2  ;;  %v1265_v62 = vrot.slane %v1264_v8, 1 }
 0x3a2   :  { %v1238_v10 = vmul.f32 %v1924_v59, %v2350_v23  ;;  %v1284_v31 = vadd.f32 %v1283_v21, %v1282_v9  ;;  %v1322_v35 = vadd.f32 %v1320_v30, %v1248_v26 }
 0x3a3   :  { %v1296_v61 = vadd.f32 %v1295_v52, %v1235_v50  ;;  %v1291_v16 = vadd.f32 %v1290_v4, %v1289_v51  ;;  %v1266_v23 = vadd.f32 %v1265_v62, %v1264_v8 }
 0x3a4   :  { %v1926_v63 = vpop.eup %1925  ;;  %v1326_v38 = vadd.f32 %v1320_v30, %v1284_v31 }
 0x3a5   :  { %v1237_v3 = vmul.f32 %v1926_v63, %v2343_v12  ;;  %v1297_v5 = vrot.slane %v1296_v61, 4  ;;  %v1928_v6 = vpop.eup %1927  ;;  %v1274_v12 = vrot.slane %v1273_v13, 1  ;;  %v1292_v22 = vrot.slane %v1291_v16, 1 }
 0x3a6   :  { %v1239_v15 = vmul.f32 %v1928_v6, %v2367_v53  ;;  %v1323_v53 = vadd.f32 %v1320_v30, %v1257_v42  ;;  %v1324_v33 = vadd.f32 %v1320_v30, %v1266_v23 }
 0x3a7   :  { %v1303_v11 = vadd.f32 %v1237_v3, %v1236_v2  ;;  %v1298_v55 = vadd.f32 %v1297_v5, %v1296_v61  ;;  %v1275_v27 = vadd.f32 %v1274_v12, %v1273_v13  ;;  %v1293_v28 = vadd.f32 %v1292_v22, %v1291_v16 }
 0x3a8   :  { %v1339_v41 = vsel %vm1338_vm2, %v1323_v53, %v1322_v35 }
 0x3a9   :  { %v1299_v17 = vrot.slane %v1298_v55, 2  ;;  %v1304_v18 = vadd.f32 %v1303_v11, %v1238_v10  ;;  %v1325_v37 = vadd.f32 %v1320_v30, %v1275_v27  ;;  %v1327_v40 = vadd.f32 %v1320_v30, %v1293_v28 }
 0x3aa   :  { %v1341_v44 = vsel %vm1340_vm3, %v1324_v33, %v1339_v41 }
 0x3ab   :  { %v1300_v0 = vadd.f32 %v1299_v17, %v1298_v55  ;;  %v1305_v20 = vadd.f32 %v1304_v18, %v1239_v15  ;;  %v1343_v46 = vsel %vm1342_vm4, %v1325_v37, %v1341_v44 }
 0x3ac   :  { %v1345_v47 = vsel %vm1344_vm5, %v1326_v38, %v1343_v46 }
 0x3ad   :  { %v1306_v24 = vrot.slane %v1305_v20, 4  ;;  %v1301_v25 = vrot.slane %v1300_v0, 1  ;;  %v1347_v49 = vsel %vm1346_vm6, %v1327_v40, %v1345_v47 }
 0x3af   :  { %v1307_v29 = vadd.f32 %v1306_v24, %v1305_v20  ;;  %v1302_v34 = vadd.f32 %v1301_v25, %v1300_v0 }
 0x3b1   :  { %v1308_v32 = vrot.slane %v1307_v29, 2  ;;  %v1328_v43 = vadd.f32 %v1320_v30, %v1302_v34 }
 0x3b3   :  { %v1309_v36 = vadd.f32 %v1308_v32, %v1307_v29  ;;  %v1349_v50 = vsel %vm1348_vm7, %v1328_v43, %v1347_v49 }
 0x3b5   :  { %v1310_v39 = vrot.slane %v1309_v36, 1 }
 0x3b7   :  { %v1311_v45 = vadd.f32 %v1310_v39, %v1309_v36 }
 0x3b9   :  { %v1329_v48 = vadd.f32 %v1320_v30, %v1311_v45 }
 0x3bb   :  { %v1351_v51 = vsel %vm1350_vm8, %v1329_v48, %v1349_v50 }
 0x3bc   :  { %1353 = vst [vmem:[#allocation3] sm:$0xff] %v1351_v51 }
 0x3bd   :  { %1940 = shalt.err (!%p1937_p4)
}
 0x3be   :  { %1363 = dma.vmem_to_hbm [thread:$0]  %s1361_s28, 128, %s2405_s9, [#allocation4]  }
 0x3bf   :  { %1949 = dma.done.wait [#allocation4], 128  }
 0x3c0   :  { %1950 = vsyncadd [#allocation4], 4294967168 }
 0x3c1   :  { %1367 = vsyncpa [#allocation4], 1 }

</bundles_post_ra>
